<compile_context>
chip_gen: v5e
topology: v5e:2x2
jax: 0.10.0
libtpu: 0.0.40
codegen_flags: <defaults>
</compile_context>

<pallas_src>
import jax
import jax.numpy as jnp
from jax.experimental import pallas as pl
from jax.experimental.pallas import tpu as pltpu


def _centernorm_kernel(x_ref, w_ref, o_ref):
    # x_ref: (TR, D) rows; w_ref: (1, D) weight with scale pre-folded.
    x = x_ref[...].astype(jnp.float32)
    u = jnp.mean(x, axis=-1, keepdims=True)
    o_ref[...] = ((x - u) * w_ref[...]).astype(o_ref.dtype)


def _centernorm_packed_kernel(x_ref, w_ref, m_ref, o_ref):
    # x_ref: (TR, k*D) packed rows; m_ref: (k*D, k*D) block-diagonal averaging
    # matrix (1/D inside each DxD diagonal block), so x @ M broadcasts every
    # D-segment's mean across that segment — no in-kernel reshapes, no masked
    # lanes.  w_ref: (1, k*D) tiled weight with scale pre-folded.
    x = x_ref[...].astype(jnp.float32)
    u = jnp.dot(x, m_ref[...], preferred_element_type=jnp.float32)
    o_ref[...] = ((x - u) * w_ref[...]).astype(o_ref.dtype)


def center_norm(x, weight):
    """x: (B, N, D) float array; weight: (D,) float array."""
    B, N, D = x.shape
    rows = B * N
    scale = float(D) / (float(D) - 1.0)

    # Lane-dense packing: pack k = 128/D rows per lane-row when possible.
    if D < 128 and 128 % D == 0 and rows % (128 // D) == 0:
        k = 128 // D
    else:
        k = 1
    packed_rows = rows // k
    packed_D = k * D

    x2 = x.reshape(packed_rows, packed_D)
    # Fold the D/(D-1) scale into the (tiled) weight — removes the SMEM scalar
    # operand and one full-tile multiply.
    w2 = jnp.tile(weight.astype(jnp.float32).reshape(1, D), (1, k)) * scale

    itemsize = jnp.dtype(x.dtype).itemsize
    # VMEM budget: in + out tiles, double buffered => 4 live buffers. ~12 MiB
    # keeps us comfortably inside every generation's scoped VMEM (with the
    # 32 MiB limit below) while tiles are big enough to sit near HBM roofline.
    budget_bytes = 12 * 1024 * 1024
    tr = budget_bytes // (4 * packed_D * max(itemsize, 4))
    tr = max(16, min(1024, (tr // 16) * 16))  # multiple of 16: f32 & bf16 safe
    if tr >= packed_rows:
        tr = packed_rows                      # block == full array dims: legal
        grid = (1,)
    else:
        grid = (pl.cdiv(packed_rows, tr),)    # Pallas masks the partial block

    row_spec = pl.BlockSpec((tr, packed_D), lambda i: (i, 0))
    w_spec = pl.BlockSpec((1, packed_D), lambda i: (0, 0))

    cost = pl.CostEstimate(
        flops=4 * rows * D,
        transcendentals=0,
        bytes_accessed=2 * rows * D * itemsize,
    )
    cparams = pltpu.CompilerParams(
        dimension_semantics=("parallel",),      # megacore-shardable on v7x
        vmem_limit_bytes=32 * 1024 * 1024,      # raise v5e's 16 MiB default
    )
    out_shape = jax.ShapeDtypeStruct((packed_rows, packed_D), x.dtype)

    if k > 1:
        lane = jnp.arange(packed_D)
        seg = lane // D
        avg = jnp.where(seg[:, None] == seg[None, :], 1.0 / D, 0.0)
        avg = avg.astype(jnp.float32)
        out2 = pl.pallas_call(
            _centernorm_packed_kernel,
            out_shape=out_shape,
            grid_spec=pltpu.PrefetchScalarGridSpec(
                num_scalar_prefetch=0,
                grid=grid,
                in_specs=[
                    row_spec,
                    w_spec,
                    pl.BlockSpec((packed_D, packed_D), lambda i: (0, 0)),
                ],
                out_specs=row_spec,
            ),
            compiler_params=cparams,
            cost_estimate=cost,
        )(x2, w2, avg)
    else:
        out2 = pl.pallas_call(
            _centernorm_kernel,
            out_shape=out_shape,
            grid_spec=pltpu.PrefetchScalarGridSpec(
                num_scalar_prefetch=0,
                grid=grid,
                in_specs=[row_spec, w_spec],
                out_specs=row_spec,
            ),
            compiler_params=cparams,
            cost_estimate=cost,
        )(x2, w2)

    out = out2.reshape(B, N, D)
    # PyTorch's x.squeeze(): drop any size-1 dims.
    return jnp.squeeze(out)


def center_norm_ref(x, weight):
    B, N, D = x.shape
    scale = D / (D - 1.0)
    u = jnp.mean(x, axis=-1, keepdims=True)
    y = scale * (x - u)
    y = weight[None, None, :] * y
    return jnp.squeeze(y)


if __name__ == "__main__":
    key = jax.random.PRNGKey(0)
    B, N, D = 2, 8, 32
    x = jax.random.normal(key, (B, N, D), dtype=jnp.float32)
    # nn.Parameter(torch.ones(normalized_shape)) -> deterministic ones
    weight = jnp.ones((D,), dtype=jnp.float32)

    out = center_norm(x, weight)
    out = jax.block_until_ready(out)

    ref = center_norm_ref(x, weight)
    assert out.shape == ref.shape, (out.shape, ref.shape)
    assert jnp.allclose(out, ref, atol=1e-5, rtol=1e-5), "mismatch vs reference"

    print("KERNEL_OK")
</pallas_src>

<mosaic_0001>
module attributes {stable_mosaic.version = 11 : i64} {
  func.func @_centernorm_packed_kernel(%arg0: i32, %arg1: memref<4x128xf32, #tpu.memory_space<vmem>>, %arg2: memref<1x128xf32, #tpu.memory_space<vmem>>, %arg3: memref<128x128xf32, #tpu.memory_space<vmem>>, %arg4: memref<4x128xf32, #tpu.memory_space<vmem>>) attributes {dimension_semantics = [#tpu.dimension_semantics<parallel>], iteration_bounds = array<i64: 1>, scalar_prefetch = 0 : i64, scratch_operands = 0 : i64, tpu.core_type = #tpu.core_type<tc>, window_params = [{transform_indices = @transform_0, window_bounds = array<i64: 4, 128>}, {pipeline_mode = #tpu.pipeline_mode<synchronous>, transform_indices = @transform_1, window_bounds = array<i64: 1, 128>}, {pipeline_mode = #tpu.pipeline_mode<synchronous>, transform_indices = @transform_2, window_bounds = array<i64: 128, 128>}, {transform_indices = @transform_3, window_bounds = array<i64: 4, 128>}]} {
    %c0 = arith.constant 0 : index
    %c0_0 = arith.constant 0 : index
    %0 = vector.load %arg1[%c0, %c0_0] : memref<4x128xf32, #tpu.memory_space<vmem>>, vector<4x128xf32>
    %c0_1 = arith.constant 0 : index
    %c0_2 = arith.constant 0 : index
    %1 = vector.load %arg3[%c0_1, %c0_2] : memref<128x128xf32, #tpu.memory_space<vmem>>, vector<128x128xf32>
    %cst = arith.constant dense<0.000000e+00> : vector<4x128xf32>
    %2 = tpu.matmul %0, %1, %cst {dimension_numbers = #tpu.dot_dimension_numbers<[1], [0], [0], [1], [0, 0, 1, 1], [], []>} : vector<4x128xf32>, vector<128x128xf32>, vector<4x128xf32> -> vector<4x128xf32>
    %3 = arith.subf %0, %2 : vector<4x128xf32>
    %c0_3 = arith.constant 0 : index
    %c0_4 = arith.constant 0 : index
    %4 = vector.load %arg2[%c0_3, %c0_4] : memref<1x128xf32, #tpu.memory_space<vmem>>, vector<1x128xf32>
    %5 = vector.broadcast %4 : vector<1x128xf32> to vector<4x128xf32>
    %6 = arith.mulf %3, %5 : vector<4x128xf32>
    %c0_5 = arith.constant 0 : index
    %c0_6 = arith.constant 0 : index
    %7 = vector.load %arg4[%c0_5, %c0_6] : memref<4x128xf32, #tpu.memory_space<vmem>>, vector<4x128xf32>
    tpu.vector_store %arg4[%c0_5, %c0_6], %6 {strides = array<i32>} : memref<4x128xf32, #tpu.memory_space<vmem>>, vector<4x128xf32>,
    return
  }
  func.func @transform_0(%arg0: i32) -> (i32, i32) {
    %c0_i32 = arith.constant 0 : i32
    %c0_i32_0 = arith.constant 0 : i32
    return %arg0, %c0_i32 : i32, i32
  }
  func.func @transform_1(%arg0: i32) -> (i32, i32) {
    %c0_i32 = arith.constant 0 : i32
    %c0_i32_0 = arith.constant 0 : i32
    %c0_i32_1 = arith.constant 0 : i32
    return %c0_i32, %c0_i32_0 : i32, i32
  }
  func.func @transform_2(%arg0: i32) -> (i32, i32) {
    %c0_i32 = arith.constant 0 : i32
    %c0_i32_0 = arith.constant 0 : i32
    %c0_i32_1 = arith.constant 0 : i32
    return %c0_i32, %c0_i32_0 : i32, i32
  }
  func.func @transform_3(%arg0: i32) -> (i32, i32) {
    %c0_i32 = arith.constant 0 : i32
    %c0_i32_0 = arith.constant 0 : i32
    return %arg0, %c0_i32 : i32, i32
  }
}

</mosaic_0001>

<bundles_post_ra>
// kernel: tpu_custom_call.1
= control target key start
LH: loop header
LB: loop body
LE: loop exit
PB: predicated region body
PF: predicated region fallthrough
CT: control target
= control target key end

     0   :  { %8 = vsyncpa [#allocation3], 0  ;;  %s267_s0 = inlined_call_operand.hbm [shape: f32[4,128], index: 0, kind: input, shape index: {}]   ;;  %s268_s1 = inlined_call_operand.hbm [shape: f32[1,128], index: 1, kind: input, shape index: {}]   ;;  %s269_s2 = inlined_call_operand.hbm [shape: f32[128,128], index: 2, kind: input, shape index: {}]   ;;  %s270_s3 = inlined_call_operand.hbm [shape: f32[4,128], index: 3, kind: output, shape index: {}]  }
   0x1   :  { %9 = vsyncpa [#allocation6], 0  ;;  %s27_s14 = sshll.u32 %s268_s1, 4  ;;  %s28_s14 = int_to_ptr.hbm [resolvable:$true] %s27_s14 }
   0x2   :  { %10 = vsyncpa [#allocation4], 0  ;;  %s229_s15 = smov [#allocation5]   ;;  %s16_s19 = sshll.u32 %s267_s0, 4  ;;  %s17_s19 = int_to_ptr.hbm [resolvable:$true] %s16_s19 }
   0x3   :  { %s29_s16 = sshll.u32 %s229_s15, 4  ;;  %s230_s20 = smov [#allocation2]   ;;  %s30_s16 = int_to_ptr.vmem [resolvable:$true] %s29_s16 }
   0x4   :  { %32 = dma.hbm_to_vmem [thread:$0]  %s28_s14, 16, %s30_s16, [#allocation6]  }
   0x5   :  { %s18_s21 = sshll.u32 %s230_s20, 4  ;;  %s37_s24 = sshll.u32 %s269_s2, 4  ;;  %s19_s21 = int_to_ptr.vmem [resolvable:$true] %s18_s21  ;;  %s38_s24 = int_to_ptr.hbm [resolvable:$true] %s37_s24 }
   0x6   :  { %21 = dma.hbm_to_vmem [thread:$0]  %s17_s19, 64, %s19_s21, [#allocation3]  }
   0x7   :  { %s231_s1 = smov [#allocation7]   ;;  %s232_s26 = smov 128  }
   0x8   :  { %s39_s25 = sshll.u32 %s231_s1, 4  ;;  %s233_s27 = smov 8   ;;  %s40_s25 = int_to_ptr.vmem [resolvable:$true] %s39_s25 }
   0x9   :  { %45 = dma.hbm_to_vmem [thread:$0]  %s38_s24, 2048, %s40_s25, [#allocation6], %s232_s26, %s232_s26, %s233_s27  }
   0xa   :  { %223 = dma.done.wait [#allocation3], 64  }
   0xb   :  { %224 = vsyncadd [#allocation3], 4294967232 }
   0xc   :  { %225 = dma.done.wait [#allocation6], 2064  }
   0xd   :  { %226 = vsyncadd [#allocation6], 4294965232  ;;  %v74_v0 = vld [vmem:[#allocation7 + $0x78] sm:$0xff]  ;;  %v73_v1 = vld [vmem:[#allocation7 + $0x70] sm:$0xff]  ;;  %s234_s0 = smov [#allocation8]   ;;  %s109_s30 = sshll.u32 %s270_s3, 4  ;;  %s110_s30 = int_to_ptr.hbm [resolvable:$true] %s109_s30 }
   0xe   :  { %75 = vmatpush.msra.mxu0 %v74_v0  ;;  %v72_v2 = vld [vmem:[#allocation7 + $0x68] sm:$0xff]  ;;  %v71_v3 = vld [vmem:[#allocation7 + $0x60] sm:$0xff]  ;;  %v70_v4 = vld [vmem:[#allocation7 + $0x58] sm:$0xff]  ;;  %s107_s2 = sshll.u32 %s234_s0, 4  ;;  %s108_s2 = int_to_ptr.vmem [resolvable:$true] %s107_s2 }
   0xf   :  { %v69_v5 = vld [vmem:[#allocation7 + $0x50] sm:$0xff]  ;;  %v68_v6 = vld [vmem:[#allocation7 + $0x48] sm:$0xff]  ;;  %v67_v7 = vld [vmem:[#allocation7 + $0x40] sm:$0xff] }
  0x10   :  { %76 = vmatpush.msra.mxu0 %v73_v1  ;;  %v66_v8 = vld [vmem:[#allocation7 + $0x38] sm:$0xff]  ;;  %v65_v9 = vld [vmem:[#allocation7 + $0x30] sm:$0xff]  ;;  %v64_v10 = vld [vmem:[#allocation7 + $0x28] sm:$0xff] }
  0x11   :  { %v63_v11 = vld [vmem:[#allocation7 + $0x20] sm:$0xff]  ;;  %v62_v12 = vld [vmem:[#allocation7 + $0x18] sm:$0xff]  ;;  %v61_v13 = vld [vmem:[#allocation7 + $0x10] sm:$0xff] }
  0x12   :  { %77 = vmatpush.msra.mxu0 %v72_v2  ;;  %v60_v14 = vld [vmem:[#allocation7 + $0x8] sm:$0xff]  ;;  %v59_v15 = vld [vmem:[#allocation7] sm:$0xff]  ;;  %v58_v16 = vld [vmem:[#allocation2] sm:$0xf] }
  0x13   :  { %v126_v17 = vld [vmem:[#allocation5] ss:$0 sm:$0xff] }
  0x14   :  { %78 = vmatpush.msra.mxu0 %v71_v3 }
  0x16   :  { %79 = vmatpush.msra.mxu0 %v70_v4 }
  0x18   :  { %80 = vmatpush.msra.mxu0 %v69_v5 }
  0x1a   :  { %81 = vmatpush.msra.mxu0 %v68_v6 }
  0x1c   :  { %82 = vmatpush.msra.mxu0 %v67_v7 }
  0x1e   :  { %83 = vmatpush.msra.mxu0 %v66_v8 }
  0x20   :  { %84 = vmatpush.msra.mxu0 %v65_v9 }
  0x22   :  { %85 = vmatpush.msra.mxu0 %v64_v10 }
  0x24   :  { %86 = vmatpush.msra.mxu0 %v63_v11 }
  0x26   :  { %87 = vmatpush.msra.mxu0 %v62_v12 }
  0x28   :  { %88 = vmatpush.msra.mxu0 %v61_v13 }
  0x2a   :  { %89 = vmatpush.msra.mxu0 %v60_v14 }
  0x2c   :  { %90 = vmatpush.msra.mxu0 %v59_v15 }
  0x2d   :  { %91 = vmatmul.f32.vlgmr.msra.gmra.mxu0 %v58_v16 }
  0xaa   :  { %v92_v18 = vpop.f32.mrf.mxu0 }
  0xab   :  { %v95_v19 = vsub.f32 %v58_v16, %v92_v18 }
  0xad   :  { %v100_v20 = vmul.f32 %v126_v17, %v95_v19 }
  0xaf   :  { %101 = vst [vmem:[#allocation8] sm:$0xf] %v100_v20 }
  0xb0   :  { %112 = dma.vmem_to_hbm [thread:$0]  %s108_s2, 64, %s110_s30, [#allocation4]  }
  0xb1   :  { %227 = dma.done.wait [#allocation4], 64  }
  0xb2   :  { %228 = vsyncadd [#allocation4], 4294967232 }
  0xb3   :  { %117 = vsyncpa [#allocation3], 1 }
  0xb4   :  { %118 = vsyncpa [#allocation6], 1 }
  0xb5   :  { %119 = vsyncpa [#allocation4], 1 }

</bundles_post_ra>
